<compile_context>
chip_gen: v6e
topology: v6e:2x2x1
jax: 0.10.0
libtpu: 0.0.40
codegen_flags: <defaults>
</compile_context>

<pallas_src>
import jax
import jax.numpy as jnp
from jax import lax
from jax.experimental import pallas as pl
from jax.experimental.pallas import tpu as pltpu


def mlp_kernel(x_ref,
               w1_ref, b1_ref,
               w2_ref, b2_ref,
               w3_ref, b3_ref,
               w4_ref, b4_ref,
               o_ref):
    """Fused 4-layer MLP. x block: (TILE_B, in) bf16; activations kept as
    (features, TILE_B) so batch maps to lanes and all stores are lane-dense."""
    x = x_ref[...]  # (TILE_B, in) bf16

    # layer1 (+ folded BN) + ReLU:  W1 (128,in) contracted with x (TILE_B,in)
    # -> (128, TILE_B); f32 accumulation on the MXU.
    h = lax.dot_general(w1_ref[...], x, (((1,), (1,)), ((), ())),
                        preferred_element_type=jnp.float32)
    h = jnp.maximum(h + b1_ref[...], 0.0).astype(jnp.bfloat16)

    # layer2 (+ folded BN) + ReLU:  (64,128) @ (128,TILE_B)
    h = jnp.dot(w2_ref[...], h, preferred_element_type=jnp.float32)
    h = jnp.maximum(h + b2_ref[...], 0.0).astype(jnp.bfloat16)

    # layer3 (+ folded BN) + ReLU:  (32,64) @ (64,TILE_B)
    h = jnp.dot(w3_ref[...], h, preferred_element_type=jnp.float32)
    h = jnp.maximum(h + b3_ref[...], 0.0).astype(jnp.bfloat16)

    # layer4 (no activation):  (1,32) @ (32,TILE_B) -> (1, TILE_B)  lane-dense store
    o_ref[...] = jnp.dot(w4_ref[...], h, preferred_element_type=jnp.float32) + b4_ref[...]


def price_predictor_forward(x, folded_params, *, tile_b=1024):
    """x: (B, input_size) float32. Returns (B, 1) float32 (eval-mode forward)."""
    B, in_dim = x.shape
    (w1, b1), (w2, b2), (w3, b3), (w4, b4) = folded_params

    # Batch tile: multiple of 128 (lane-dense output), don't over-pad tiny batches.
    tile_b = min(tile_b, pl.cdiv(B, 128) * 128)
    num_tiles = pl.cdiv(B, tile_b)
    b_pad = num_tiles * tile_b
    if b_pad != B:
        x = jnp.pad(x, ((0, b_pad - B), (0, 0)))
    x = x.astype(jnp.bfloat16)

    def resident(arr):  # full-array block, constant index_map -> stays in VMEM
        return pl.BlockSpec(arr.shape, lambda i: (0, 0))

    flops = 2 * b_pad * (in_dim * 128 + 128 * 64 + 64 * 32 + 32 * 1)
    weight_bytes = sum(int(w.size) * 2 + int(b.size) * 4 for w, b in folded_params)
    bytes_accessed = b_pad * in_dim * 2 + b_pad * 4 + weight_bytes

    out = pl.pallas_call(
        mlp_kernel,
        out_shape=jax.ShapeDtypeStruct((1, b_pad), jnp.float32),
        grid=(num_tiles,),
        in_specs=[
            pl.BlockSpec((tile_b, in_dim), lambda i: (i, 0)),
            resident(w1), resident(b1),
            resident(w2), resident(b2),
            resident(w3), resident(b3),
            resident(w4), resident(b4),
        ],
        out_specs=pl.BlockSpec((1, tile_b), lambda i: (0, i)),
        compiler_params=pltpu.CompilerParams(dimension_semantics=("parallel",)),
        cost_estimate=pl.CostEstimate(flops=flops, transcendentals=0,
                                      bytes_accessed=bytes_accessed),
    )(x, w1, b1, w2, b2, w3, b3, w4, b4)

    return out[0, :B].reshape(B, 1)


def init_params(key, input_size):
    """PyTorch-style raw parameters: Linear weights (out, in) ~ U(+-1/sqrt(fan_in)),
    biases (out,), BatchNorm1d at default init (gamma=1, beta=0, mean=0, var=1)."""
    dims = [(input_size, 128), (128, 64), (64, 32), (32, 1)]
    keys = jax.random.split(key, 2 * len(dims))
    linears, bns = [], []
    for i, (fan_in, fan_out) in enumerate(dims):
        bound = float(fan_in) ** -0.5
        w = jax.random.uniform(keys[2 * i], (fan_out, fan_in),
                               minval=-bound, maxval=bound, dtype=jnp.float32)
        b = jax.random.uniform(keys[2 * i + 1], (fan_out,),
                               minval=-bound, maxval=bound, dtype=jnp.float32)
        linears.append((w, b))
        if i < 3:
            bns.append((jnp.ones((fan_out,), jnp.float32),    # gamma
                        jnp.zeros((fan_out,), jnp.float32),   # beta
                        jnp.zeros((fan_out,), jnp.float32),   # running_mean
                        jnp.ones((fan_out,), jnp.float32)))   # running_var
    return {"linears": linears, "bns": bns}


def fold_params(raw, eps=1e-5):
    """Fold eval-mode BatchNorm into the preceding Linear; cast MXU weights to bf16.
    Biases stay f32 as (out, 1) columns (broadcast along the lane/batch axis)."""
    folded = []
    for i, (w, b) in enumerate(raw["linears"]):
        if i < len(raw["bns"]):
            gamma, beta, mean, var = raw["bns"][i]
            scale = gamma / jnp.sqrt(var + eps)
            shift = beta - mean * scale
            w = w * scale[:, None]
            b = b * scale + shift
        folded.append((w.astype(jnp.bfloat16),
                       b.reshape(-1, 1).astype(jnp.float32)))
    return tuple(folded)


def reference_forward(x, raw, eps=1e-5):
    """Exact f32 eval-mode reference (matches the PyTorch module in eval())."""
    h = x
    for i, (w, b) in enumerate(raw["linears"]):
        h = h @ w.T + b
        if i < len(raw["bns"]):
            gamma, beta, mean, var = raw["bns"][i]
            h = (h - mean) * (gamma / jnp.sqrt(var + eps)) + beta
            h = jnp.maximum(h, 0.0)
    return h


def reference_forward_folded(x, folded):
    """Reference with the same bf16 matmul casts as the kernel."""
    h = x.astype(jnp.bfloat16)
    for i, (w, b) in enumerate(folded):
        h = jnp.dot(h, w.T, preferred_element_type=jnp.float32) + b.reshape(1, -1)
        if i < len(folded) - 1:
            h = jnp.maximum(h, 0.0).astype(jnp.bfloat16)
    return h


if __name__ == "__main__":
    key = jax.random.PRNGKey(0)
    k_x, k_p = jax.random.split(key)

    batch = 8
    input_size = 32
    x = jax.random.normal(k_x, (batch, input_size), dtype=jnp.float32)

    raw_params = init_params(k_p, input_size)
    folded_params = fold_params(raw_params)

    out = jax.block_until_ready(price_predictor_forward(x, folded_params))

    assert out.shape == (batch, 1), out.shape
    ref_matched = reference_forward_folded(x, folded_params)   # same bf16 casts
    ref_exact = reference_forward(x, raw_params)               # f32 eval semantics
    assert jnp.allclose(out, ref_matched, atol=2e-3, rtol=2e-3), \
        "mismatch vs bf16-matched reference"
    assert jnp.allclose(out, ref_exact, atol=5e-2, rtol=5e-2), \
        "mismatch vs f32 eval-mode reference"

    print("KERNEL_OK")
</pallas_src>

<mosaic_0001>
module attributes {stable_mosaic.version = 11 : i64} {
  func.func @mlp_kernel(%arg0: i32, %arg1: memref<128x32xbf16, #tpu.memory_space<vmem>>, %arg2: memref<128x32xbf16, #tpu.memory_space<vmem>>, %arg3: memref<128x1xf32, #tpu.memory_space<vmem>>, %arg4: memref<64x128xbf16, #tpu.memory_space<vmem>>, %arg5: memref<64x1xf32, #tpu.memory_space<vmem>>, %arg6: memref<32x64xbf16, #tpu.memory_space<vmem>>, %arg7: memref<32x1xf32, #tpu.memory_space<vmem>>, %arg8: memref<1x32xbf16, #tpu.memory_space<vmem>>, %arg9: memref<1x1xf32, #tpu.memory_space<vmem>>, %arg10: memref<1x128xf32, #tpu.memory_space<vmem>>) attributes {dimension_semantics = [#tpu.dimension_semantics<parallel>], iteration_bounds = array<i64: 1>, scalar_prefetch = 0 : i64, scratch_operands = 0 : i64, tpu.core_type = #tpu.core_type<tc>, window_params = [{transform_indices = @transform_0, window_bounds = array<i64: 128, 32>}, {pipeline_mode = #tpu.pipeline_mode<synchronous>, transform_indices = @transform_1, window_bounds = array<i64: 128, 32>}, {pipeline_mode = #tpu.pipeline_mode<synchronous>, transform_indices = @transform_2, window_bounds = array<i64: 128, 1>}, {pipeline_mode = #tpu.pipeline_mode<synchronous>, transform_indices = @transform_3, window_bounds = array<i64: 64, 128>}, {pipeline_mode = #tpu.pipeline_mode<synchronous>, transform_indices = @transform_4, window_bounds = array<i64: 64, 1>}, {pipeline_mode = #tpu.pipeline_mode<synchronous>, transform_indices = @transform_5, window_bounds = array<i64: 32, 64>}, {pipeline_mode = #tpu.pipeline_mode<synchronous>, transform_indices = @transform_6, window_bounds = array<i64: 32, 1>}, {pipeline_mode = #tpu.pipeline_mode<synchronous>, transform_indices = @transform_7, window_bounds = array<i64: 1, 32>}, {pipeline_mode = #tpu.pipeline_mode<synchronous>, transform_indices = @transform_8, window_bounds = array<i64: 1, 1>}, {transform_indices = @transform_9, window_bounds = array<i64: 1, 128>}]} {
    %c0 = arith.constant 0 : index
    %c0_0 = arith.constant 0 : index
    %0 = vector.load %arg1[%c0, %c0_0] : memref<128x32xbf16, #tpu.memory_space<vmem>>, vector<128x32xbf16>
    %c0_1 = arith.constant 0 : index
    %c0_2 = arith.constant 0 : index
    %1 = vector.load %arg2[%c0_1, %c0_2] : memref<128x32xbf16, #tpu.memory_space<vmem>>, vector<128x32xbf16>
    %cst = arith.constant dense<0.000000e+00> : vector<128x128xf32>
    %2 = tpu.matmul %1, %0, %cst {dimension_numbers = #tpu.dot_dimension_numbers<[1], [1], [0], [0], [0, 0, 1, 0], [], []>} : vector<128x32xbf16>, vector<128x32xbf16>, vector<128x128xf32> -> vector<128x128xf32>
    %c0_3 = arith.constant 0 : index
    %c0_4 = arith.constant 0 : index
    %3 = vector.load %arg3[%c0_3, %c0_4] : memref<128x1xf32, #tpu.memory_space<vmem>>, vector<128x1xf32>
    %4 = vector.broadcast %3 : vector<128x1xf32> to vector<128x128xf32>
    %5 = arith.addf %2, %4 : vector<128x128xf32>
    %cst_5 = arith.constant 0.000000e+00 : f32
    %6 = vector.broadcast %cst_5 : f32 to vector<128x128xf32>
    %7 = arith.maximumf %5, %6 : vector<128x128xf32>
    %8 = arith.truncf %7 : vector<128x128xf32> to vector<128x128xbf16>
    %c0_6 = arith.constant 0 : index
    %c0_7 = arith.constant 0 : index
    %9 = vector.load %arg4[%c0_6, %c0_7] : memref<64x128xbf16, #tpu.memory_space<vmem>>, vector<64x128xbf16>
    %cst_8 = arith.constant dense<0.000000e+00> : vector<64x128xf32>
    %10 = tpu.matmul %9, %8, %cst_8 {dimension_numbers = #tpu.dot_dimension_numbers<[1], [0], [0], [1], [0, 0, 1, 1], [], []>} : vector<64x128xbf16>, vector<128x128xbf16>, vector<64x128xf32> -> vector<64x128xf32>
    %c0_9 = arith.constant 0 : index
    %c0_10 = arith.constant 0 : index
    %11 = vector.load %arg5[%c0_9, %c0_10] : memref<64x1xf32, #tpu.memory_space<vmem>>, vector<64x1xf32>
    %12 = vector.broadcast %11 : vector<64x1xf32> to vector<64x128xf32>
    %13 = arith.addf %10, %12 : vector<64x128xf32>
    %cst_11 = arith.constant 0.000000e+00 : f32
    %14 = vector.broadcast %cst_11 : f32 to vector<64x128xf32>
    %15 = arith.maximumf %13, %14 : vector<64x128xf32>
    %16 = arith.truncf %15 : vector<64x128xf32> to vector<64x128xbf16>
    %c0_12 = arith.constant 0 : index
    %c0_13 = arith.constant 0 : index
    %17 = vector.load %arg6[%c0_12, %c0_13] : memref<32x64xbf16, #tpu.memory_space<vmem>>, vector<32x64xbf16>
    %cst_14 = arith.constant dense<0.000000e+00> : vector<32x128xf32>
    %18 = tpu.matmul %17, %16, %cst_14 {dimension_numbers = #tpu.dot_dimension_numbers<[1], [0], [0], [1], [0, 0, 1, 1], [], []>} : vector<32x64xbf16>, vector<64x128xbf16>, vector<32x128xf32> -> vector<32x128xf32>
    %c0_15 = arith.constant 0 : index
    %c0_16 = arith.constant 0 : index
    %19 = vector.load %arg7[%c0_15, %c0_16] : memref<32x1xf32, #tpu.memory_space<vmem>>, vector<32x1xf32>
    %20 = vector.broadcast %19 : vector<32x1xf32> to vector<32x128xf32>
    %21 = arith.addf %18, %20 : vector<32x128xf32>
    %cst_17 = arith.constant 0.000000e+00 : f32
    %22 = vector.broadcast %cst_17 : f32 to vector<32x128xf32>
    %23 = arith.maximumf %21, %22 : vector<32x128xf32>
    %24 = arith.truncf %23 : vector<32x128xf32> to vector<32x128xbf16>
    %c0_18 = arith.constant 0 : index
    %c0_19 = arith.constant 0 : index
    %25 = vector.load %arg8[%c0_18, %c0_19] : memref<1x32xbf16, #tpu.memory_space<vmem>>, vector<1x32xbf16>
    %cst_20 = arith.constant dense<0.000000e+00> : vector<1x128xf32>
    %26 = tpu.matmul %25, %24, %cst_20 {dimension_numbers = #tpu.dot_dimension_numbers<[1], [0], [0], [1], [0, 0, 1, 1], [], []>} : vector<1x32xbf16>, vector<32x128xbf16>, vector<1x128xf32> -> vector<1x128xf32>
    %c0_21 = arith.constant 0 : index
    %c0_22 = arith.constant 0 : index
    %27 = vector.load %arg9[%c0_21, %c0_22] : memref<1x1xf32, #tpu.memory_space<vmem>>, vector<1x1xf32>
    %28 = vector.broadcast %27 : vector<1x1xf32> to vector<1x128xf32>
    %29 = arith.addf %26, %28 : vector<1x128xf32>
    %c0_23 = arith.constant 0 : index
    %c0_24 = arith.constant 0 : index
    %30 = vector.load %arg10[%c0_23, %c0_24] : memref<1x128xf32, #tpu.memory_space<vmem>>, vector<1x128xf32>
    tpu.vector_store %arg10[%c0_23, %c0_24], %29 {strides = array<i32>} : memref<1x128xf32, #tpu.memory_space<vmem>>, vector<1x128xf32>,
    return
  }
  func.func @transform_0(%arg0: i32) -> (i32, i32) {
    %c0_i32 = arith.constant 0 : i32
    %c0_i32_0 = arith.constant 0 : i32
    return %arg0, %c0_i32 : i32, i32
  }
  func.func @transform_1(%arg0: i32) -> (i32, i32) {
    %c0_i32 = arith.constant 0 : i32
    %c0_i32_0 = arith.constant 0 : i32
    %c0_i32_1 = arith.constant 0 : i32
    return %c0_i32, %c0_i32_0 : i32, i32
  }
  func.func @transform_2(%arg0: i32) -> (i32, i32) {
    %c0_i32 = arith.constant 0 : i32
    %c0_i32_0 = arith.constant 0 : i32
    %c0_i32_1 = arith.constant 0 : i32
    return %c0_i32, %c0_i32_0 : i32, i32
  }
  func.func @transform_3(%arg0: i32) -> (i32, i32) {
    %c0_i32 = arith.constant 0 : i32
    %c0_i32_0 = arith.constant 0 : i32
    %c0_i32_1 = arith.constant 0 : i32
    return %c0_i32, %c0_i32_0 : i32, i32
  }
  func.func @transform_4(%arg0: i32) -> (i32, i32) {
    %c0_i32 = arith.constant 0 : i32
    %c0_i32_0 = arith.constant 0 : i32
    %c0_i32_1 = arith.constant 0 : i32
    return %c0_i32, %c0_i32_0 : i32, i32
  }
  func.func @transform_5(%arg0: i32) -> (i32, i32) {
    %c0_i32 = arith.constant 0 : i32
    %c0_i32_0 = arith.constant 0 : i32
    %c0_i32_1 = arith.constant 0 : i32
    return %c0_i32, %c0_i32_0 : i32, i32
  }
  func.func @transform_6(%arg0: i32) -> (i32, i32) {
    %c0_i32 = arith.constant 0 : i32
    %c0_i32_0 = arith.constant 0 : i32
    %c0_i32_1 = arith.constant 0 : i32
    return %c0_i32, %c0_i32_0 : i32, i32
  }
  func.func @transform_7(%arg0: i32) -> (i32, i32) {
    %c0_i32 = arith.constant 0 : i32
    %c0_i32_0 = arith.constant 0 : i32
    %c0_i32_1 = arith.constant 0 : i32
    return %c0_i32, %c0_i32_0 : i32, i32
  }
  func.func @transform_8(%arg0: i32) -> (i32, i32) {
    %c0_i32 = arith.constant 0 : i32
    %c0_i32_0 = arith.constant 0 : i32
    %c0_i32_1 = arith.constant 0 : i32
    return %c0_i32, %c0_i32_0 : i32, i32
  }
  func.func @transform_9(%arg0: i32) -> (i32, i32) {
    %c0_i32 = arith.constant 0 : i32
    %c0_i32_0 = arith.constant 0 : i32
    return %c0_i32, %arg0 : i32, i32
  }
}

</mosaic_0001>

<bundles_post_ra>
// kernel: tpu_custom_call.1
= control target key start
LH: loop header
LB: loop body
LE: loop exit
PB: predicated region body
PF: predicated region fallthrough
CT: control target
= control target key end

     0   :  { %s1193_s0 = inlined_call_operand.vmem [shape: bf16[128,32], index: 0, kind: input, shape index: {}]   ;;  %s1194_s1 = inlined_call_operand.vmem [shape: bf16[128,32], index: 1, kind: input, shape index: {}]   ;;  %s1195_s2 = inlined_call_operand.vmem [shape: f32[128,1], index: 2, kind: input, shape index: {}]   ;;  %s1196_s3 = inlined_call_operand.vmem [shape: bf16[64,128], index: 3, kind: input, shape index: {}]   ;;  %s1197_s4 = inlined_call_operand.vmem [shape: f32[64,1], index: 4, kind: input, shape index: {}]   ;;  %s1198_s5 = inlined_call_operand.vmem [shape: bf16[32,64], index: 5, kind: input, shape index: {}]   ;;  %s1199_s6 = inlined_call_operand.vmem [shape: f32[32,1], index: 6, kind: input, shape index: {}]   ;;  %s1200_s7 = inlined_call_operand.vmem [shape: bf16[1,32], index: 7, kind: input, shape index: {}]   ;;  %s1201_s8 = inlined_call_operand.<no memory space> [shape: f32[1,1], index: 8, kind: input, shape index: {}]   ;;  %s1202_s9 = inlined_call_operand.hbm [shape: f32[1,128], index: 9, kind: output, shape index: {}]  }
   0x1   :  { %v14_v0 = vstv %s1201_s8 }
   0x2   :  { %15 = vst [vmem:[#allocation2] sm:$0x1] %v14_v0 }
   0x3   :  { %v900_v1 = vld [vmem:[%s1193_s0 + $0x38] sm:$0xff]   ;;  %vm244_vm0 = vcmask 261120   ;;  %v901_v2 = vld [vmem:[%s1193_s0 + $0x30] sm:$0xff]   ;;  %v944_v4 = vmov 0   ;;  %v902_v5 = vld [vmem:[%s1193_s0 + $0x28] sm:$0xff]  }
   0x4   :  { %886 = vmatprep.subr.msk.bf16.mxu0 %vm244_vm0, %v900_v1  ;;  %v291_v3 = vsel %vm244_vm0, %v900_v1, 0  ;;  %898 = vset.pattern.permute.xlu0 %v944_v4  ;;  %v288_v6 = vsel %vm244_vm0, %v901_v2, 0  ;;  %v908_v7 = vld [vmem:[%s1194_s1] sm:$0xff]   ;;  %v285_v8 = vsel %vm244_vm0, %v902_v5, 0  ;;  %v82_v10 = vld [vmem:[%s1195_s2 + $0x70] sm:$0xff]  ;;  %v83_v12 = vld [vmem:[%s1195_s2 + $0x78] sm:$0xff] }
   0x5   :  { %811 = vmatpush3.bf16.xpose.msra.mxu0 %v291_v3  ;;  %899 = vset.pattern.permute.xlu1 %v944_v4  ;;  %v903_v9 = vld [vmem:[%s1193_s0 + $0x20] sm:$0xff]   ;;  %v81_v13 = vld [vmem:[%s1195_s2 + $0x68] sm:$0xff]  ;;  %v78_v14 = vld [vmem:[%s1195_s2 + $0x50] sm:$0xff] }
   0x6   :  { %887 = vmatprep.subr.msk.bf16.mxu0 %vm244_vm0, %v901_v2  ;;  %826 = vmatprep.mubr.msk.bf16.mxu0 %vm244_vm0, %v908_v7  ;;  %v80_v11 = vld [vmem:[%s1195_s2 + $0x60] sm:$0xff]  ;;  %v79_v15 = vld [vmem:[%s1195_s2 + $0x58] sm:$0xff]  ;;  %v282_v16 = vsel %vm244_vm0, %v903_v9, 0  ;;  %v77_v19 = vld [vmem:[%s1195_s2 + $0x48] sm:$0xff] }
   0x7   :  { %156 = vperm.xlu0 %898, %v82_v10   ;;  %146 = vperm.xlu1 %899, %v80_v11   ;;  %v904_v17 = vld [vmem:[%s1193_s0 + $0x18] sm:$0xff]   ;;  %v76_v18 = vld [vmem:[%s1195_s2 + $0x40] sm:$0xff] }
   0xb   :  { %161 = vperm.xlu0 %898, %v83_v12   ;;  %151 = vperm.xlu1 %899, %v81_v13  }
   0xd   :  { %813 = vmatpush3.bf16.xpose.msra.mxu0 %v288_v6 }
   0xe   :  { %888 = vmatprep.subr.msk.bf16.mxu0 %vm244_vm0, %v902_v5 }
   0xf   :  { %136 = vperm.xlu0 %898, %v78_v14   ;;  %141 = vperm.xlu1 %899, %v79_v15  }
  0x13   :  { %126 = vperm.xlu0 %898, %v76_v18   ;;  %131 = vperm.xlu1 %899, %v77_v19  }
  0x15   :  { %815 = vmatpush3.bf16.xpose.msra.mxu0 %v285_v8 }
  0x16   :  { %889 = vmatprep.subr.msk.bf16.mxu0 %vm244_vm0, %v903_v9 }
  0x1d   :  { %817 = vmatpush3.bf16.xpose.msra.mxu0 %v282_v16 }
  0x1e   :  { %890 = vmatprep.subr.msk.bf16.mxu0 %vm244_vm0, %v904_v17 }
  0x1f   :  { %16 = vsyncpa [#allocation4], 0  ;;  %v74_v20 = vld [vmem:[%s1195_s2 + $0x30] sm:$0xff]  ;;  %v75_v21 = vld [vmem:[%s1195_s2 + $0x38] sm:$0xff]  ;;  %v279_v22 = vsel %vm244_vm0, %v904_v17, 0  ;;  %vm609_vm1 = vcmask 523264  }
  0x20   :  { %v905_v23 = vld [vmem:[%s1193_s0 + $0x10] sm:$0xff]   ;;  %116 = vperm.xlu0 %898, %v74_v20   ;;  %121 = vperm.xlu1 %899, %v75_v21   ;;  %v72_v24 = vld [vmem:[%s1195_s2 + $0x20] sm:$0xff]  ;;  %v73_v25 = vld [vmem:[%s1195_s2 + $0x28] sm:$0xff]  ;;  %vm946_vm2 = vmmov 0   ;;  %s947_s15 = smov [#allocation3]  }
  0x21   :  { %v70_v26 = vld [vmem:[%s1195_s2 + $0x10] sm:$0xff]  ;;  %v71_v27 = vld [vmem:[%s1195_s2 + $0x18] sm:$0xff]  ;;  %v276_v28 = vsel %vm244_vm0, %v905_v23, 0  ;;  %v906_v29 = vld [vmem:[%s1193_s0 + $0x8] sm:$0xff]  }
  0x22   :  { %v68_v30 = vld [vmem:[%s1195_s2] sm:$0xff]  ;;  %v69_v31 = vld [vmem:[%s1195_s2 + $0x8] sm:$0xff]  ;;  %v428_v32 = vld [vmem:[%s1197_s4 + $0x30] sm:$0xff]  ;;  %v273_v34 = vsel %vm244_vm0, %v906_v29, 0 }
  0x23   :  { %v429_v33 = vld [vmem:[%s1197_s4 + $0x38] sm:$0xff]  ;;  %v907_v35 = vld [vmem:[%s1193_s0] sm:$0xff]   ;;  %v427_v37 = vld [vmem:[%s1197_s4 + $0x28] sm:$0xff] }
  0x24   :  { %106 = vperm.xlu0 %898, %v72_v24   ;;  %111 = vperm.xlu1 %899, %v73_v25   ;;  %v426_v36 = vld [vmem:[%s1197_s4 + $0x20] sm:$0xff]  ;;  %v424_v38 = vld [vmem:[%s1197_s4 + $0x10] sm:$0xff]  ;;  %v425_v39 = vld [vmem:[%s1197_s4 + $0x18] sm:$0xff]  ;;  %v270_v40 = vsel %vm244_vm0, %v907_v35, 0 }
  0x25   :  { %819 = vmatpush3.bf16.xpose.msra.mxu0 %v279_v22  ;;  %v422_v41 = vld [vmem:[%s1197_s4] sm:$0xff]  ;;  %v423_v42 = vld [vmem:[%s1197_s4 + $0x8] sm:$0xff]  ;;  %v577_v44 = vld [vmem:[%s1199_s6 + $0x10] sm:$0xff]  ;;  %s732_s4 = sshll.u32 %s947_s15, 4  ;;  %s733_s4 = int_to_ptr.vmem [resolvable:$true] %s732_s4 }
  0x26   :  { %891 = vmatprep.subr.msk.bf16.mxu0 %vm244_vm0, %v905_v23  ;;  %v909_v43 = vld [vmem:[%s1194_s1 + $0x8] sm:$0xff]   ;;  %v578_v45 = vld [vmem:[%s1199_s6 + $0x18] sm:$0xff]  ;;  %v910_v46 = vld [vmem:[%s1194_s1 + $0x10] sm:$0xff]   ;;  %s922_s16 = scalar_lea.vmem %s733_s4, 16  ;;  %s926_s17 = scalar_lea.vmem %s733_s4, 32 }
  0x27   :  { %v575_v47 = vld [vmem:[%s1199_s6] sm:$0xff]  ;;  %v576_v48 = vld [vmem:[%s1199_s6 + $0x8] sm:$0xff]  ;;  %v911_v49 = vld [vmem:[%s1194_s1 + $0x18] sm:$0xff]   ;;  %p923_p0 = scmp.ne.s32.totalorder %s733_s4, %s922_s16  ;;  %p927_p1 = scmp.lt.s32.totalorder %s733_s4, %s733_s4 }
  0x28   :  { %96 = vperm.xlu0 %898, %v70_v26   ;;  %101 = vperm.xlu1 %899, %v71_v27   ;;  %v672_v50 = vld [vmem:[#allocation2] sm:$0x1]  ;;  %v913_v52 = vld [vmem:[%s1194_s1 + $0x28] sm:$0xff]   ;;  %v914_v53 = vld [vmem:[%s1194_s1 + $0x30] sm:$0xff]   ;;  %p928_p2 = scmp.lt.s32.totalorder %s926_s17, %s922_s16 }
  0x29   :  { %v912_v51 = vld [vmem:[%s1194_s1 + $0x20] sm:$0xff]   ;;  %v915_v54 = vld [vmem:[%s1194_s1 + $0x38] sm:$0xff]  }
  0x2a   :  { %v916_v55 = vld [vmem:[%s1196_s3] sm:$0xff]   ;;  %p929_p3 = por %p928_p2, %p927_p1 }
  0x2b   :  { %858 = vmatprep.mubr.bf16.mxu1 %v916_v55 }
  0x2c   :  { %86 = vperm.xlu0 %898, %v68_v30   ;;  %91 = vperm.xlu1 %899, %v69_v31   ;;  %p930_p4 = pnand %p929_p3, %p923_p0 }
  0x2d   :  { %821 = vmatpush3.bf16.xpose.msra.mxu0 %v276_v28 }
  0x2e   :  { %892 = vmatprep.subr.msk.bf16.mxu0 %vm244_vm0, %v906_v29 }
  0x30   :  { %462 = vperm.xlu0 %898, %v428_v32   ;;  %467 = vperm.xlu1 %899, %v429_v33  }
  0x34   :  { %452 = vperm.xlu0 %898, %v426_v36   ;;  %457 = vperm.xlu1 %899, %v427_v37  }
  0x35   :  { %823 = vmatpush3.bf16.xpose.msra.mxu0 %v273_v34 }
  0x36   :  { %893 = vmatprep.subr.msk.bf16.mxu0 %vm244_vm0, %v907_v35 }
  0x38   :  { %442 = vperm.xlu0 %898, %v424_v38   ;;  %447 = vperm.xlu1 %899, %v425_v39  }
  0x3c   :  { %432 = vperm.xlu0 %898, %v422_v41   ;;  %437 = vperm.xlu1 %899, %v423_v42  }
  0x3d   :  { %825 = vmatpush3.bf16.xpose.msra.mxu0 %v270_v40 }
  0x40   :  { %591 = vperm.xlu0 %898, %v577_v44   ;;  %596 = vperm.xlu1 %899, %v578_v45  }
  0x44   :  { %827 = vmatmul.mubr.msk.bf16.vlgmr.msra.gmra.mxu0 %vm244_vm0, %v909_v43  ;;  %581 = vperm.xlu0 %898, %v575_v47  }
  0x45   :  { %830 = vmatprep.mubr.msk.bf16.mxu0 %vm244_vm0, %v910_v46  ;;  %586 = vperm.xlu1 %899, %v576_v48  }
  0x48   :  { %675 = vperm.xlu0 %898, %v672_v50  }
  0x4c   :  { %831 = vmatmul.mubr.msk.bf16.gmra.mxu0 %vm244_vm0, %v911_v49 }
  0x4d   :  { %834 = vmatprep.mubr.msk.bf16.mxu0 %vm244_vm0, %v912_v51 }
  0x54   :  { %835 = vmatmul.mubr.msk.bf16.gmra.mxu0 %vm244_vm0, %v913_v52 }
  0x55   :  { %838 = vmatprep.mubr.msk.bf16.mxu0 %vm244_vm0, %v914_v53 }
  0x5c   :  { %839 = vmatmul.mubr.msk.bf16.gmra.mxu0 %vm244_vm0, %v915_v54 }
  0x82   :  { %v147_v60 = vpop.permute.xlu1 %146  ;;  %v157_v62 = vpop.permute.xlu0 %156 }
  0x86   :  { %v152_v1 = vpop.permute.xlu1 %151  ;;  %v162_v3 = vpop.permute.xlu0 %161 }
  0x8a   :  { %v142_v6 = vpop.permute.xlu1 %141  ;;  %v137_v8 = vpop.permute.xlu0 %136 }
  0x8e   :  { %v132_v11 = vpop.permute.xlu1 %131  ;;  %v127_v14 = vpop.permute.xlu0 %126 }
  0x9b   :  { %v122_v23 = vpop.permute.xlu1 %121  ;;  %v117_v28 = vpop.permute.xlu0 %116 }
  0x9f   :  { %v112_v34 = vpop.permute.xlu1 %111  ;;  %v107_v38 = vpop.permute.xlu0 %106 }
  0xa3   :  { %v102_v44 = vpop.permute.xlu1 %101  ;;  %v97_v47 = vpop.permute.xlu0 %96 }
  0xa7   :  { %v92_v53 = vpop.permute.xlu1 %91 }
 0x104   :  { %v1160_v56 = vpop.f32.mrf.mxu0 }
 0x105   :  { %v336_v51 = vadd.f32 %v1160_v56, %v97_v47  ;;  %v917_v56 = vld [vmem:[%s1196_s3 + $0x8] sm:$0xff]  }
 0x106   :  { %v1162_v57 = vpop.f32.mrf.mxu0 }
 0x108   :  { %v829_v58 = vpop.f32.mrf.mxu0 }
 0x109   :  { %v339_v48 = vadd.f32 %v829_v58, %v102_v44 }
 0x10a   :  { %v1164_v59 = vpop.f32.mrf.mxu0 }
 0x10b   :  { %v393_v54 = vmax.f32 %v339_v48, 0.0  ;;  %v331_v55 = vadd.f32 %v1164_v59, %v92_v53  ;;  %v918_v59 = vld [vmem:[%s1196_s3 + $0x10] sm:$0xff]  }
 0x10c   :  { %v832_v61 = vpop.f32.mrf.mxu0 }
 0x10d   :  { %v352_v39 = vadd.f32 %v832_v61, %v117_v28  ;;  %v87_v61 = vpop.permute.xlu0 %86  ;;  %v391_v58 = vmax.f32 %v331_v55, 0.0 }
 0x10e   :  { %v343_v63 = vpop.f32.mrf.mxu0 }
 0x10f   :  { %v396_v45 = vmax.f32 %v352_v39, 0.0  ;;  %v344_v46 = vadd.f32 %v343_v63, %v107_v38  ;;  %v328_v63 = vadd.f32 %v1162_v57, %v87_v61  ;;  %v919_v57 = vld [vmem:[%s1196_s3 + $0x18] sm:$0xff]  }
 0x110   :  { %v833_v0 = vpop.f32.mrf.mxu0 }
 0x111   :  { %v355_v35 = vadd.f32 %v833_v0, %v122_v23  ;;  %v394_v52 = vmax.f32 %v344_v46, 0.0 }
 0x112   :  { %v346_v2 = vpop.f32.mrf.mxu0 }
 0x113   :  { %v397_v41 = vmax.f32 %v355_v35, 0.0  ;;  %v347_v42 = vadd.f32 %v346_v2, %v112_v34 }
 0x114   :  { %v836_v4 = vpop.f32.mrf.mxu0 }
 0x115   :  { %v368_v24 = vadd.f32 %v836_v4, %v137_v8  ;;  %v409_v49 = vpack.c.bf16 %v397_v41, %v396_v45  ;;  %v395_v50 = vmax.f32 %v347_v42, 0.0  ;;  %v468_v4 = vpop.permute.xlu1 %467  ;;  %v945_v41 = vmov 0.0  }
 0x116   :  { %v359_v5 = vpop.f32.mrf.mxu0 }
 0x117   :  { %v400_v32 = vmax.f32 %v368_v24, 0.0  ;;  %v360_v33 = vadd.f32 %v359_v5, %v127_v14 }
 0x118   :  { %v837_v7 = vpop.f32.mrf.mxu0 }
 0x119   :  { %v371_v19 = vadd.f32 %v837_v7, %v142_v6  ;;  %v398_v40 = vmax.f32 %v360_v33, 0.0  ;;  %v463_v6 = vpop.permute.xlu0 %462 }
 0x11a   :  { %v362_v9 = vpop.f32.mrf.mxu0 }
 0x11b   :  { %v401_v29 = vmax.f32 %v371_v19, 0.0  ;;  %v363_v30 = vadd.f32 %v362_v9, %v132_v11  ;;  %v458_v9 = vpop.permute.xlu1 %457 }
 0x11c   :  { %v840_v10 = vpop.f32.mrf.mxu0 }
 0x11d   :  { %v384_v13 = vadd.f32 %v840_v10, %v157_v62  ;;  %v411_v36 = vpack.c.bf16 %v401_v29, %v400_v32  ;;  %v399_v37 = vmax.f32 %v363_v30, 0.0  ;;  %v392_v62 = vmax.f32 %v336_v51, 0.0  ;;  %v453_v11 = vpop.permute.xlu0 %452 }
 0x11e   :  { %v375_v12 = vpop.f32.mrf.mxu0 }
 0x11f   :  { %v376_v16 = vadd.f32 %v375_v12, %v147_v60  ;;  %v404_v20 = vmax.f32 %v384_v13, 0.0  ;;  %v410_v43 = vpack.c.bf16 %v399_v37, %v398_v40  ;;  %v408_v60 = vpack.c.bf16 %v395_v50, %v394_v52  ;;  %v921_v40 = vld [vmem:[%s1198_s5 + $0x8] sm:$0xff]  }
 0x120   :  { %v841_v15 = vpop.f32.mrf.mxu0  ;;  %v407_v0 = vpack.c.bf16 %v393_v54, %v392_v62 }
 0x121   :  { %v387_v17 = vadd.f32 %v841_v15, %v162_v3  ;;  %v402_v25 = vmax.f32 %v376_v16, 0.0  ;;  %v920_v3 = vld [vmem:[%s1198_s5] sm:$0xff]   ;;  %v448_v15 = vpop.permute.xlu1 %447  ;;  %v443_v19 = vpop.permute.xlu0 %442 }
 0x122   :  { %v378_v18 = vpop.f32.mrf.mxu0 }
 0x123   :  { %v405_v21 = vmax.f32 %v387_v17, 0.0  ;;  %v379_v22 = vadd.f32 %v378_v18, %v152_v1  ;;  %v390_v1 = vmax.f32 %v328_v63, 0.0 }
 0x125   :  { %v403_v26 = vmax.f32 %v379_v22, 0.0  ;;  %v413_v27 = vpack.c.bf16 %v405_v21, %v404_v20  ;;  %v406_v2 = vpack.c.bf16 %v391_v58, %v390_v1  ;;  %v438_v29 = vpop.permute.xlu1 %437  ;;  %v433_v33 = vpop.permute.xlu0 %432  ;;  %v678_v58 = vlaneseq }
 0x127   :  { %v412_v31 = vpack.c.bf16 %v403_v26, %v402_v25  ;;  %842 = vmatprep.subr.bf16.mxu1 %v413_v27  ;;  %v679_v1 = vshrl.u32 %v678_v58, 7 }
 0x128   :  { %843 = vmatpush3.bf16.msra.mxu1 %v413_v27 }
 0x129   :  { %844 = vmatprep.subr.bf16.mxu1 %v412_v31  ;;  %v592_v42 = vpop.permute.xlu0 %591 }
 0x12c   :  { %845 = vmatpush3.bf16.msra.mxu1 %v412_v31 }
 0x12d   :  { %846 = vmatprep.subr.bf16.mxu1 %v411_v36  ;;  %v582_v48 = vpop.permute.xlu0 %581 }
 0x130   :  { %847 = vmatpush3.bf16.msra.mxu1 %v411_v36 }
 0x131   :  { %848 = vmatprep.subr.bf16.mxu1 %v410_v43 }
 0x134   :  { %849 = vmatpush3.bf16.msra.mxu1 %v410_v43  ;;  %v597_v43 = vpop.permute.xlu1 %596 }
 0x135   :  { %850 = vmatprep.subr.bf16.mxu1 %v409_v49 }
 0x138   :  { %851 = vmatpush3.bf16.msra.mxu1 %v409_v49  ;;  %v587_v50 = vpop.permute.xlu1 %586 }
 0x139   :  { %852 = vmatprep.subr.bf16.mxu1 %v408_v60 }
 0x13c   :  { %853 = vmatpush3.bf16.msra.mxu1 %v408_v60 }
 0x13d   :  { %854 = vmatprep.subr.bf16.mxu1 %v407_v0 }
 0x140   :  { %855 = vmatpush3.bf16.msra.mxu1 %v407_v0  ;;  %v671_v0 = vld [vmem:[%s1200_s7] sm:$0x1] }
 0x141   :  { %856 = vmatprep.subr.bf16.mxu1 %v406_v2 }
 0x144   :  { %857 = vmatpush3.bf16.msra.mxu1 %v406_v2  ;;  %v680_v2 = vsub.s32 0, %v679_v1 }
 0x147   :  { %859 = vmatmul.mubr.bf16.vlgmr.msra.gmra.mxu1 %v917_v56  ;;  %v676_v56 = vpop.permute.xlu0 %675 }
 0x148   :  { %862 = vmatprep.mubr.bf16.mxu1 %v918_v59  ;;  %v681_v59 = vrot.slane %v676_v56, %v680_v2 }
 0x14f   :  { %863 = vmatmul.mubr.bf16.gmra.mxu1 %v919_v57 }
 0x150   :  { %874 = vmatprep.mubr.msk.bf16.mxu1 %vm609_vm1, %v920_v3 }
 0x207   :  { %v860_v5 = vpop.f32.mrf.mxu1 }
 0x208   :  { %v537_v25 = vadd.f32 %v860_v5, %v443_v19 }
 0x209   :  { %v528_v7 = vpop.f32.mrf.mxu1 }
 0x20a   :  { %v561_v34 = vmax.f32 %v537_v25, 0.0  ;;  %v529_v35 = vadd.f32 %v528_v7, %v433_v33 }
 0x20b   :  { %v861_v8 = vpop.f32.mrf.mxu1 }
 0x20c   :  { %v540_v21 = vadd.f32 %v861_v8, %v448_v15  ;;  %v559_v38 = vmax.f32 %v529_v35, 0.0 }
 0x20d   :  { %v531_v10 = vpop.f32.mrf.mxu1 }
 0x20e   :  { %v562_v30 = vmax.f32 %v540_v21, 0.0  ;;  %v532_v31 = vadd.f32 %v531_v10, %v438_v29 }
 0x20f   :  { %v864_v12 = vpop.f32.mrf.mxu1 }
 0x210   :  { %v553_v14 = vadd.f32 %v864_v12, %v463_v6  ;;  %v568_v36 = vpack.c.bf16 %v562_v30, %v561_v34  ;;  %v560_v37 = vmax.f32 %v532_v31, 0.0 }
 0x211   :  { %v544_v13 = vpop.f32.mrf.mxu1 }
 0x212   :  { %v545_v17 = vadd.f32 %v544_v13, %v453_v11  ;;  %v565_v22 = vmax.f32 %v553_v14, 0.0  ;;  %v567_v39 = vpack.c.bf16 %v560_v37, %v559_v38 }
 0x213   :  { %v865_v16 = vpop.f32.mrf.mxu1 }
 0x214   :  { %v556_v18 = vadd.f32 %v865_v16, %v468_v4  ;;  %v563_v26 = vmax.f32 %v545_v17, 0.0 }
 0x215   :  { %v547_v20 = vpop.f32.mrf.mxu1 }
 0x216   :  { %v566_v23 = vmax.f32 %v556_v18, 0.0  ;;  %v548_v24 = vadd.f32 %v547_v20, %v458_v9 }
 0x218   :  { %v570_v27 = vpack.c.bf16 %v566_v23, %v565_v22  ;;  %v564_v28 = vmax.f32 %v548_v24, 0.0 }
 0x21a   :  { %v569_v32 = vpack.c.bf16 %v564_v28, %v563_v26  ;;  %866 = vmatprep.subr.bf16.mxu1 %v570_v27 }
 0x21b   :  { %867 = vmatpush3.bf16.msra.mxu1 %v570_v27 }
 0x21c   :  { %868 = vmatprep.subr.bf16.mxu1 %v569_v32 }
 0x21f   :  { %869 = vmatpush3.bf16.msra.mxu1 %v569_v32 }
 0x220   :  { %870 = vmatprep.subr.bf16.mxu1 %v568_v36 }
 0x223   :  { %871 = vmatpush3.bf16.msra.mxu1 %v568_v36 }
 0x224   :  { %872 = vmatprep.subr.bf16.mxu1 %v567_v39 }
 0x227   :  { %873 = vmatpush3.bf16.msra.mxu1 %v567_v39 }
 0x228   :  { %878 = vmatprep.subr.bf16.mxu1 %v945_v41 }
 0x22a   :  { %875 = vmatmul.mubr.msk.bf16.vlgmr.msra.gmra.mxu1 %vm609_vm1, %v921_v40 }
 0x22b   :  { %882 = vmatprep.mubr.msk.bf16.mxu1 %vm946_vm2, %v945_v41 }
 0x2ea   :  { %v876_v44 = vpop.f32.mrf.mxu1 }
 0x2eb   :  { %v659_v46 = vadd.f32 %v876_v44, %v592_v42 }
 0x2ec   :  { %v650_v45 = vpop.f32.mrf.mxu1 }
 0x2ed   :  { %v667_v52 = vmax.f32 %v659_v46, 0.0  ;;  %v651_v53 = vadd.f32 %v650_v45, %v582_v48 }
 0x2ee   :  { %v877_v47 = vpop.f32.mrf.mxu1 }
 0x2ef   :  { %v662_v49 = vadd.f32 %v877_v47, %v597_v43  ;;  %v665_v62 = vmax.f32 %v651_v53, 0.0 }
 0x2f0   :  { %v653_v51 = vpop.f32.mrf.mxu1 }
 0x2f1   :  { %v668_v54 = vmax.f32 %v662_v49, 0.0  ;;  %v654_v55 = vadd.f32 %v653_v51, %v587_v50 }
 0x2f3   :  { %v670_v60 = vpack.c.bf16 %v668_v54, %v667_v52  ;;  %v666_v61 = vmax.f32 %v654_v55, 0.0 }
 0x2f5   :  { %879 = vmatpush3.bf16.msra.mxu1 %v670_v60  ;;  %v669_v63 = vpack.c.bf16 %v666_v61, %v665_v62 }
 0x2f6   :  { %880 = vmatprep.subr.bf16.mxu1 %v945_v41 }
 0x2f9   :  { %881 = vmatpush3.bf16.msra.mxu1 %v669_v63 }
 0x2fc   :  { %883 = vmatmul.mubr.msk.bf16.vlgmr.msra.gmra.mxu1 %vm244_vm0, %v671_v0 }
 0x3bc   :  { %v719_v57 = vpop.f32.mrf.mxu1 }
 0x3bd   :  { %v720_v3 = vadd.f32 %v719_v57, %v681_v59 }
 0x3be   :  { %v884_v4 = vpop.f32.mrf.mxu1 }
 0x3bf   :  { %725 = vst [vmem:[#allocation3] sm:$0x1] %v720_v3 }
 0x3c0   :  { %v722_v5 = vpop.f32.mrf.mxu1 }
 0x3c1   :  { %933 = shalt.err (!%p930_p4)
}
 0x3c2   :  { %735 = dma.vmem_to_hbm [thread:$0]  %s733_s4, 16, %s1202_s9, [#allocation4]   ;;  %v885_v6 = vpop.f32.mrf.mxu1 }
 0x3c3   :  { %942 = dma.done.wait [#allocation4], 16  }
 0x3c4   :  { %943 = vsyncadd [#allocation4], 4294967280 }
 0x3c5   :  { %739 = vsyncpa [#allocation4], 1 }

</bundles_post_ra>
